<compile_context>
chip_gen: v7x
topology: tpu7x:2x2x1
jax: 0.10.0
libtpu: 0.0.40
codegen_flags: <defaults>
</compile_context>

<pallas_src>
import jax
import jax.numpy as jnp
from jax import lax
from jax.experimental import pallas as pl
from jax.experimental.pallas import tpu as pltpu

POOL = 4  # nn.AvgPool2d(4)


# ---------------------------------------------------------------------------
# Kernel
# ---------------------------------------------------------------------------
def _l_spa_kernel(ph_ref, pwt_ref, msub_h_ref, msup_h_ref, msub_w_ref,
                  msup_w_ref, org_ref, enh_ref, out_ref):
    # org_ref / enh_ref: (C, tile_h, W) VMEM tiles (batch dim squeezed)
    # out_ref:           (1, 1, hp, wp) resident across the H-tile grid axis
    t = pl.program_id(1)
    c, tile_h, w = org_ref.shape
    rpt = ph_ref.shape[0]  # pooled rows produced per H tile (= tile_h // 4)

    # --- channel sum of (org - enh); one (tile_h, W) slab live at a time ---
    def chan_body(ci, acc):
        o = org_ref[ci].astype(jnp.float32)
        e = enh_ref[ci].astype(jnp.float32)
        return acc + (o - e)

    d = lax.fori_loop(0, c, chan_body,
                      jnp.zeros((tile_h, w), jnp.float32), unroll=True)

    # --- 4x4 avg pool of the channel-mean difference: Ph @ d @ PwT ---
    # (1/16 split as 0.25 * 0.25 across Ph/PwT; 1/C folded into PwT)
    tmp = jnp.dot(d, pwt_ref[...], preferred_element_type=jnp.float32)    # (tile_h, wp)
    rows = jnp.dot(ph_ref[...], tmp, preferred_element_type=jnp.float32)  # (rpt, wp)

    row0 = pl.multiple_of(t * rpt, rpt)
    out_ref[0, 0, pl.ds(row0, rpt), :] = rows.astype(out_ref.dtype)

    # --- epilogue: directional differences + squares, once per image ---
    @pl.when(t == pl.num_programs(1) - 1)
    def _finalize():
        p = out_ref[0, 0].astype(jnp.float32)  # pooled (org - enh), (hp, wp)
        # Exact zero-padded neighbor shifts via tiny resident shift matrices.
        p_left = jnp.dot(p, msup_w_ref[...], preferred_element_type=jnp.float32)
        p_right = jnp.dot(p, msub_w_ref[...], preferred_element_type=jnp.float32)
        p_up = jnp.dot(msub_h_ref[...], p, preferred_element_type=jnp.float32)
        p_down = jnp.dot(msup_h_ref[...], p, preferred_element_type=jnp.float32)
        e = ((p - p_left) ** 2 + (p - p_right) ** 2
             + (p - p_up) ** 2 + (p - p_down) ** 2)
        out_ref[0, 0] = e.astype(out_ref.dtype)


# ---------------------------------------------------------------------------
# Wrapper
# ---------------------------------------------------------------------------
def _band(n_rows, n_cols, pred, value):
    r = jnp.arange(n_rows, dtype=jnp.int32)[:, None]
    c = jnp.arange(n_cols, dtype=jnp.int32)[None, :]
    return jnp.where(pred(r, c), jnp.float32(value), jnp.float32(0.0))


def _pick_tile_h(c, h, w, itemsize, target_bytes=4 << 20):
    # Largest H tile (multiple of 4; multiple of 8 unless full-H for the
    # (8,128) block constraint) whose input block stays under target_bytes.
    cands = [th for th in range(POOL, h + 1, POOL)
             if h % th == 0 and (th == h or th % 8 == 0)]
    fitting = [th for th in cands if c * th * w * itemsize <= target_bytes]
    return max(fitting) if fitting else min(cands)


def l_spa(org, enhance):
    """Pallas implementation of L_spa.forward. Inputs: (B, C, H, W)."""
    b, c, h, w = org.shape
    assert h % POOL == 0 and w % POOL == 0, "H and W must be multiples of 4"
    hp, wp = h // POOL, w // POOL
    itemsize = jnp.dtype(org.dtype).itemsize

    tile_h = _pick_tile_h(c, h, w, itemsize)
    n_t = h // tile_h
    rpt = tile_h // POOL

    # Constant matrices, hoisted out of the kernel (resident blocks).
    ph = _band(rpt, tile_h, lambda r, cc: cc // POOL == r, 0.25)        # (rpt, tile_h)
    pwt = _band(w, wp, lambda r, cc: r // POOL == cc, 0.25 / c)         # (W, wp)
    msub_h = _band(hp, hp, lambda r, cc: r == cc + 1, 1.0)              # p[i-1, j]
    msup_h = _band(hp, hp, lambda r, cc: cc == r + 1, 1.0)              # p[i+1, j]
    msub_w = _band(wp, wp, lambda r, cc: r == cc + 1, 1.0)              # p[i, j+1]
    msup_w = _band(wp, wp, lambda r, cc: cc == r + 1, 1.0)              # p[i, j-1]

    # Scoped-VMEM budget: 2 inputs x 2 pipeline buffers x block + constants +
    # resident output, with headroom.  Clamped to stay within v7x physical VMEM.
    block_bytes = c * tile_h * w * itemsize
    const_bytes = 4 * (rpt * tile_h + w * wp + 2 * hp * hp + 2 * wp * wp)
    out_bytes = 4 * hp * wp
    need = 4 * block_bytes + 2 * (const_bytes + out_bytes) + (4 << 20)
    vmem_limit = int(min(max(need, 16 << 20), 64 << 20))

    return pl.pallas_call(
        _l_spa_kernel,
        out_shape=jax.ShapeDtypeStruct((b, 1, hp, wp), jnp.float32),
        grid=(b, n_t),
        in_specs=[
            pl.BlockSpec((rpt, tile_h), lambda bi, ti: (0, 0)),
            pl.BlockSpec((w, wp), lambda bi, ti: (0, 0)),
            pl.BlockSpec((hp, hp), lambda bi, ti: (0, 0)),
            pl.BlockSpec((hp, hp), lambda bi, ti: (0, 0)),
            pl.BlockSpec((wp, wp), lambda bi, ti: (0, 0)),
            pl.BlockSpec((wp, wp), lambda bi, ti: (0, 0)),
            pl.BlockSpec((None, c, tile_h, w), lambda bi, ti: (bi, 0, ti, 0)),
            pl.BlockSpec((None, c, tile_h, w), lambda bi, ti: (bi, 0, ti, 0)),
        ],
        out_specs=pl.BlockSpec((1, 1, hp, wp), lambda bi, ti: (bi, 0, 0, 0)),
        compiler_params=pltpu.CompilerParams(
            dimension_semantics=("parallel", "arbitrary"),
            vmem_limit_bytes=vmem_limit,
        ),
    )(ph, pwt, msub_h, msup_h, msub_w, msup_w, org, enhance)


# ---------------------------------------------------------------------------
# Pure-JAX reference mirroring the PyTorch module
# ---------------------------------------------------------------------------
def _l_spa_reference(org, enh):
    om = jnp.mean(org, axis=1, keepdims=True)
    em = jnp.mean(enh, axis=1, keepdims=True)

    def pool(x):
        b, _, h, w = x.shape
        return x.reshape(b, 1, h // POOL, POOL, w // POOL, POOL).mean(axis=(3, 5))

    op, ep = pool(om), pool(em)

    def d4(x):
        xp = jnp.pad(x, ((0, 0), (0, 0), (1, 1), (1, 1)))
        xl = xp[:, :, 1:-1, :-2]
        xr = xp[:, :, 1:-1, 2:]
        xu = xp[:, :, :-2, 1:-1]
        xd = xp[:, :, 2:, 1:-1]
        return x - xl, x - xr, x - xu, x - xd

    ol, orr, ou, od = d4(op)
    el, er, eu, ed = d4(ep)
    return (ol - el) ** 2 + (orr - er) ** 2 + (ou - eu) ** 2 + (od - ed) ** 2


if __name__ == "__main__":
    key = jax.random.PRNGKey(0)
    k1, k2 = jax.random.split(key)
    B, C, H, W = 2, 4, 16, 16
    org = jax.random.uniform(k1, (B, C, H, W), dtype=jnp.float32)
    enhance = jax.random.uniform(k2, (B, C, H, W), dtype=jnp.float32)

    out = l_spa(org, enhance)
    out = jax.block_until_ready(out)

    ref = _l_spa_reference(org, enhance)
    assert out.shape == (B, 1, H // POOL, W // POOL)
    assert jnp.allclose(out, ref, atol=1e-5, rtol=1e-5), (
        f"max abs err {float(jnp.max(jnp.abs(out - ref)))}"
    )
    print("KERNEL_OK")
</pallas_src>

<mosaic_0001>
module attributes {stable_mosaic.version = 11 : i64} {
  func.func @_l_spa_kernel(%arg0: i32, %arg1: i32, %arg2: memref<4x16xf32, #tpu.memory_space<vmem>>, %arg3: memref<16x4xf32, #tpu.memory_space<vmem>>, %arg4: memref<4x4xf32, #tpu.memory_space<vmem>>, %arg5: memref<4x4xf32, #tpu.memory_space<vmem>>, %arg6: memref<4x4xf32, #tpu.memory_space<vmem>>, %arg7: memref<4x4xf32, #tpu.memory_space<vmem>>, %arg8: memref<1x4x16x16xf32, #tpu.memory_space<vmem>>, %arg9: memref<1x4x16x16xf32, #tpu.memory_space<vmem>>, %arg10: memref<1x1x4x4xf32, #tpu.memory_space<vmem>>) attributes {dimension_semantics = [#tpu.dimension_semantics<parallel>, #tpu.dimension_semantics<arbitrary>], iteration_bounds = array<i64: 2, 1>, scalar_prefetch = 0 : i64, scratch_operands = 0 : i64, tpu.core_type = #tpu.core_type<tc>, window_params = [{pipeline_mode = #tpu.pipeline_mode<synchronous>, transform_indices = @transform_0, window_bounds = array<i64: 4, 16>}, {pipeline_mode = #tpu.pipeline_mode<synchronous>, transform_indices = @transform_1, window_bounds = array<i64: 16, 4>}, {pipeline_mode = #tpu.pipeline_mode<synchronous>, transform_indices = @transform_2, window_bounds = array<i64: 4, 4>}, {pipeline_mode = #tpu.pipeline_mode<synchronous>, transform_indices = @transform_3, window_bounds = array<i64: 4, 4>}, {pipeline_mode = #tpu.pipeline_mode<synchronous>, transform_indices = @transform_4, window_bounds = array<i64: 4, 4>}, {pipeline_mode = #tpu.pipeline_mode<synchronous>, transform_indices = @transform_5, window_bounds = array<i64: 4, 4>}, {transform_indices = @transform_6, window_bounds = array<i64: 1, 4, 16, 16>}, {transform_indices = @transform_7, window_bounds = array<i64: 1, 4, 16, 16>}, {transform_indices = @transform_8, window_bounds = array<i64: 1, 1, 4, 4>}]} {
    %cst = arith.constant 0.000000e+00 : f32
    %0 = vector.broadcast %cst : f32 to vector<16x16xf32>
    %c0_i32 = arith.constant 0 : i32
    %c0 = arith.constant 0 : index
    %1 = arith.index_cast %c0_i32 : i32 to index
    %c0_0 = arith.constant 0 : index
    %c0_1 = arith.constant 0 : index
    %2 = vector.load %arg8[%c0, %1, %c0_0, %c0_1] : memref<1x4x16x16xf32, #tpu.memory_space<vmem>>, vector<1x1x16x16xf32>
    %3 = vector.shape_cast %2 : vector<1x1x16x16xf32> to vector<16x16xf32>
    %c0_2 = arith.constant 0 : index
    %4 = arith.index_cast %c0_i32 : i32 to index
    %c0_3 = arith.constant 0 : index
    %c0_4 = arith.constant 0 : index
    %5 = vector.load %arg9[%c0_2, %4, %c0_3, %c0_4] : memref<1x4x16x16xf32, #tpu.memory_space<vmem>>, vector<1x1x16x16xf32>
    %6 = vector.shape_cast %5 : vector<1x1x16x16xf32> to vector<16x16xf32>
    %7 = arith.subf %3, %6 : vector<16x16xf32>
    %8 = arith.addf %0, %7 : vector<16x16xf32>
    %c1_i32 = arith.constant 1 : i32
    %c0_5 = arith.constant 0 : index
    %9 = arith.index_cast %c1_i32 : i32 to index
    %c0_6 = arith.constant 0 : index
    %c0_7 = arith.constant 0 : index
    %10 = vector.load %arg8[%c0_5, %9, %c0_6, %c0_7] : memref<1x4x16x16xf32, #tpu.memory_space<vmem>>, vector<1x1x16x16xf32>
    %11 = vector.shape_cast %10 : vector<1x1x16x16xf32> to vector<16x16xf32>
    %c0_8 = arith.constant 0 : index
    %12 = arith.index_cast %c1_i32 : i32 to index
    %c0_9 = arith.constant 0 : index
    %c0_10 = arith.constant 0 : index
    %13 = vector.load %arg9[%c0_8, %12, %c0_9, %c0_10] : memref<1x4x16x16xf32, #tpu.memory_space<vmem>>, vector<1x1x16x16xf32>
    %14 = vector.shape_cast %13 : vector<1x1x16x16xf32> to vector<16x16xf32>
    %15 = arith.subf %11, %14 : vector<16x16xf32>
    %16 = arith.addf %8, %15 : vector<16x16xf32>
    %c2_i32 = arith.constant 2 : i32
    %c0_11 = arith.constant 0 : index
    %17 = arith.index_cast %c2_i32 : i32 to index
    %c0_12 = arith.constant 0 : index
    %c0_13 = arith.constant 0 : index
    %18 = vector.load %arg8[%c0_11, %17, %c0_12, %c0_13] : memref<1x4x16x16xf32, #tpu.memory_space<vmem>>, vector<1x1x16x16xf32>
    %19 = vector.shape_cast %18 : vector<1x1x16x16xf32> to vector<16x16xf32>
    %c0_14 = arith.constant 0 : index
    %20 = arith.index_cast %c2_i32 : i32 to index
    %c0_15 = arith.constant 0 : index
    %c0_16 = arith.constant 0 : index
    %21 = vector.load %arg9[%c0_14, %20, %c0_15, %c0_16] : memref<1x4x16x16xf32, #tpu.memory_space<vmem>>, vector<1x1x16x16xf32>
    %22 = vector.shape_cast %21 : vector<1x1x16x16xf32> to vector<16x16xf32>
    %23 = arith.subf %19, %22 : vector<16x16xf32>
    %24 = arith.addf %16, %23 : vector<16x16xf32>
    %c3_i32 = arith.constant 3 : i32
    %c0_17 = arith.constant 0 : index
    %25 = arith.index_cast %c3_i32 : i32 to index
    %c0_18 = arith.constant 0 : index
    %c0_19 = arith.constant 0 : index
    %26 = vector.load %arg8[%c0_17, %25, %c0_18, %c0_19] : memref<1x4x16x16xf32, #tpu.memory_space<vmem>>, vector<1x1x16x16xf32>
    %27 = vector.shape_cast %26 : vector<1x1x16x16xf32> to vector<16x16xf32>
    %c0_20 = arith.constant 0 : index
    %28 = arith.index_cast %c3_i32 : i32 to index
    %c0_21 = arith.constant 0 : index
    %c0_22 = arith.constant 0 : index
    %29 = vector.load %arg9[%c0_20, %28, %c0_21, %c0_22] : memref<1x4x16x16xf32, #tpu.memory_space<vmem>>, vector<1x1x16x16xf32>
    %30 = vector.shape_cast %29 : vector<1x1x16x16xf32> to vector<16x16xf32>
    %31 = arith.subf %27, %30 : vector<16x16xf32>
    %32 = arith.addf %24, %31 : vector<16x16xf32>
    %c4_i32 = arith.constant 4 : i32
    %c0_23 = arith.constant 0 : index
    %c0_24 = arith.constant 0 : index
    %33 = vector.load %arg3[%c0_23, %c0_24] : memref<16x4xf32, #tpu.memory_space<vmem>>, vector<16x4xf32>
    %cst_25 = arith.constant dense<0.000000e+00> : vector<16x4xf32>
    %34 = tpu.matmul %32, %33, %cst_25 {dimension_numbers = #tpu.dot_dimension_numbers<[1], [0], [0], [1], [0, 0, 1, 1], [], []>} : vector<16x16xf32>, vector<16x4xf32>, vector<16x4xf32> -> vector<16x4xf32>
    %c0_26 = arith.constant 0 : index
    %c0_27 = arith.constant 0 : index
    %35 = vector.load %arg2[%c0_26, %c0_27] : memref<4x16xf32, #tpu.memory_space<vmem>>, vector<4x16xf32>
    %cst_28 = arith.constant dense<0.000000e+00> : vector<4x4xf32>
    %36 = tpu.matmul %35, %34, %cst_28 {dimension_numbers = #tpu.dot_dimension_numbers<[1], [0], [0], [1], [0, 0, 1, 1], [], []>} : vector<4x16xf32>, vector<16x4xf32>, vector<4x4xf32> -> vector<4x4xf32>
    %c4_i32_29 = arith.constant 4 : i32
    %37 = arith.muli %arg1, %c4_i32_29 : i32
    %38 = tpu.assume_multiple %37, 4 : i32
    %c0_30 = arith.constant 0 : index
    %c0_31 = arith.constant 0 : index
    %39 = arith.index_cast %38 : i32 to index
    %c0_32 = arith.constant 0 : index
    %40 = vector.load %arg10[%c0_30, %c0_31, %39, %c0_32] : memref<1x1x4x4xf32, #tpu.memory_space<vmem>>, vector<1x1x4x4xf32>
    %41 = vector.shape_cast %40 : vector<1x1x4x4xf32> to vector<4x4xf32>
    %42 = vector.shape_cast %36 : vector<4x4xf32> to vector<1x1x4x4xf32>
    tpu.vector_store %arg10[%c0_30, %c0_31, %39, %c0_32], %42 {strides = array<i32>} : memref<1x1x4x4xf32, #tpu.memory_space<vmem>>, vector<1x1x4x4xf32>,
    %c0_i32_33 = arith.constant 0 : i32
    %43 = arith.cmpi eq, %arg1, %c0_i32_33 : i32
    %44 = arith.extui %43 : i1 to i32
    %c0_i32_34 = arith.constant 0 : i32
    %45 = arith.cmpi ne, %44, %c0_i32_34 : i32
    scf.if %45 {
      %c0_35 = arith.constant 0 : index
      %c0_36 = arith.constant 0 : index
      %c0_37 = arith.constant 0 : index
      %c0_38 = arith.constant 0 : index
      %46 = vector.load %arg10[%c0_35, %c0_36, %c0_37, %c0_38] : memref<1x1x4x4xf32, #tpu.memory_space<vmem>>, vector<1x1x4x4xf32>
      %47 = vector.shape_cast %46 : vector<1x1x4x4xf32> to vector<4x4xf32>
      %c0_39 = arith.constant 0 : index
      %c0_40 = arith.constant 0 : index
      %48 = vector.load %arg7[%c0_39, %c0_40] : memref<4x4xf32, #tpu.memory_space<vmem>>, vector<4x4xf32>
      %cst_41 = arith.constant dense<0.000000e+00> : vector<4x4xf32>
      %49 = tpu.matmul %47, %48, %cst_41 {dimension_numbers = #tpu.dot_dimension_numbers<[1], [0], [0], [1], [0, 0, 1, 1], [], []>} : vector<4x4xf32>, vector<4x4xf32>, vector<4x4xf32> -> vector<4x4xf32>
      %c0_42 = arith.constant 0 : index
      %c0_43 = arith.constant 0 : index
      %50 = vector.load %arg6[%c0_42, %c0_43] : memref<4x4xf32, #tpu.memory_space<vmem>>, vector<4x4xf32>
      %cst_44 = arith.constant dense<0.000000e+00> : vector<4x4xf32>
      %51 = tpu.matmul %47, %50, %cst_44 {dimension_numbers = #tpu.dot_dimension_numbers<[1], [0], [0], [1], [0, 0, 1, 1], [], []>} : vector<4x4xf32>, vector<4x4xf32>, vector<4x4xf32> -> vector<4x4xf32>
      %c0_45 = arith.constant 0 : index
      %c0_46 = arith.constant 0 : index
      %52 = vector.load %arg4[%c0_45, %c0_46] : memref<4x4xf32, #tpu.memory_space<vmem>>, vector<4x4xf32>
      %cst_47 = arith.constant dense<0.000000e+00> : vector<4x4xf32>
      %53 = tpu.matmul %52, %47, %cst_47 {dimension_numbers = #tpu.dot_dimension_numbers<[1], [0], [0], [1], [0, 0, 1, 1], [], []>} : vector<4x4xf32>, vector<4x4xf32>, vector<4x4xf32> -> vector<4x4xf32>
      %c0_48 = arith.constant 0 : index
      %c0_49 = arith.constant 0 : index
      %54 = vector.load %arg5[%c0_48, %c0_49] : memref<4x4xf32, #tpu.memory_space<vmem>>, vector<4x4xf32>
      %cst_50 = arith.constant dense<0.000000e+00> : vector<4x4xf32>
      %55 = tpu.matmul %54, %47, %cst_50 {dimension_numbers = #tpu.dot_dimension_numbers<[1], [0], [0], [1], [0, 0, 1, 1], [], []>} : vector<4x4xf32>, vector<4x4xf32>, vector<4x4xf32> -> vector<4x4xf32>
      %56 = arith.subf %47, %49 : vector<4x4xf32>
      %57 = arith.mulf %56, %56 : vector<4x4xf32>
      %58 = arith.subf %47, %51 : vector<4x4xf32>
      %59 = arith.mulf %58, %58 : vector<4x4xf32>
      %60 = arith.addf %57, %59 : vector<4x4xf32>
      %61 = arith.subf %47, %53 : vector<4x4xf32>
      %62 = arith.mulf %61, %61 : vector<4x4xf32>
      %63 = arith.addf %60, %62 : vector<4x4xf32>
      %64 = arith.subf %47, %55 : vector<4x4xf32>
      %65 = arith.mulf %64, %64 : vector<4x4xf32>
      %66 = arith.addf %63, %65 : vector<4x4xf32>
      %c0_51 = arith.constant 0 : index
      %c0_52 = arith.constant 0 : index
      %c0_53 = arith.constant 0 : index
      %c0_54 = arith.constant 0 : index
      %67 = vector.load %arg10[%c0_51, %c0_52, %c0_53, %c0_54] : memref<1x1x4x4xf32, #tpu.memory_space<vmem>>, vector<1x1x4x4xf32>
      %68 = vector.shape_cast %67 : vector<1x1x4x4xf32> to vector<4x4xf32>
      %69 = vector.shape_cast %66 : vector<4x4xf32> to vector<1x1x4x4xf32>
      tpu.vector_store %arg10[%c0_51, %c0_52, %c0_53, %c0_54], %69 {strides = array<i32>} : memref<1x1x4x4xf32, #tpu.memory_space<vmem>>, vector<1x1x4x4xf32>,
    } else {
    }
    return
  }
  func.func @transform_0(%arg0: i32, %arg1: i32) -> (i32, i32) {
    %c0_i32 = arith.constant 0 : i32
    %c0_i32_0 = arith.constant 0 : i32
    %c0_i32_1 = arith.constant 0 : i32
    return %c0_i32, %c0_i32_0 : i32, i32
  }
  func.func @transform_1(%arg0: i32, %arg1: i32) -> (i32, i32) {
    %c0_i32 = arith.constant 0 : i32
    %c0_i32_0 = arith.constant 0 : i32
    %c0_i32_1 = arith.constant 0 : i32
    return %c0_i32, %c0_i32_0 : i32, i32
  }
  func.func @transform_2(%arg0: i32, %arg1: i32) -> (i32, i32) {
    %c0_i32 = arith.constant 0 : i32
    %c0_i32_0 = arith.constant 0 : i32
    %c0_i32_1 = arith.constant 0 : i32
    return %c0_i32, %c0_i32_0 : i32, i32
  }
  func.func @transform_3(%arg0: i32, %arg1: i32) -> (i32, i32) {
    %c0_i32 = arith.constant 0 : i32
    %c0_i32_0 = arith.constant 0 : i32
    %c0_i32_1 = arith.constant 0 : i32
    return %c0_i32, %c0_i32_0 : i32, i32
  }
  func.func @transform_4(%arg0: i32, %arg1: i32) -> (i32, i32) {
    %c0_i32 = arith.constant 0 : i32
    %c0_i32_0 = arith.constant 0 : i32
    %c0_i32_1 = arith.constant 0 : i32
    return %c0_i32, %c0_i32_0 : i32, i32
  }
  func.func @transform_5(%arg0: i32, %arg1: i32) -> (i32, i32) {
    %c0_i32 = arith.constant 0 : i32
    %c0_i32_0 = arith.constant 0 : i32
    %c0_i32_1 = arith.constant 0 : i32
    return %c0_i32, %c0_i32_0 : i32, i32
  }
  func.func @transform_6(%arg0: i32, %arg1: i32) -> (i32, i32, i32, i32) {
    %c0_i32 = arith.constant 0 : i32
    %c0_i32_0 = arith.constant 0 : i32
    %c0_i32_1 = arith.constant 0 : i32
    return %arg0, %c0_i32, %arg1, %c0_i32_0 : i32, i32, i32, i32
  }
  func.func @transform_7(%arg0: i32, %arg1: i32) -> (i32, i32, i32, i32) {
    %c0_i32 = arith.constant 0 : i32
    %c0_i32_0 = arith.constant 0 : i32
    %c0_i32_1 = arith.constant 0 : i32
    return %arg0, %c0_i32, %arg1, %c0_i32_0 : i32, i32, i32, i32
  }
  func.func @transform_8(%arg0: i32, %arg1: i32) -> (i32, i32, i32, i32) {
    %c0_i32 = arith.constant 0 : i32
    %c0_i32_0 = arith.constant 0 : i32
    %c0_i32_1 = arith.constant 0 : i32
    %c0_i32_2 = arith.constant 0 : i32
    return %arg0, %c0_i32, %c0_i32_0, %c0_i32_1 : i32, i32, i32, i32
  }
}

</mosaic_0001>

<bundles_post_ra>
// kernel: tpu_custom_call.1
= control target key start
LH: loop header
LB: loop body
LE: loop exit
PB: predicated region body
PF: predicated region fallthrough
CT: control target
= control target key end

     0   :  { %s1697_s0 = inlined_call_operand.vmem [shape: f32[4,16], index: 0, kind: input, shape index: {}]   ;;  %s1698_s1 = inlined_call_operand.vmem [shape: f32[16,4], index: 1, kind: input, shape index: {}]   ;;  %s1699_s2 = inlined_call_operand.vmem [shape: f32[4,4], index: 2, kind: input, shape index: {}]   ;;  %s1700_s3 = inlined_call_operand.vmem [shape: f32[4,4], index: 3, kind: input, shape index: {}]   ;;  %s1701_s4 = inlined_call_operand.vmem [shape: f32[4,4], index: 4, kind: input, shape index: {}]   ;;  %s1702_s5 = inlined_call_operand.vmem [shape: f32[4,4], index: 5, kind: input, shape index: {}]   ;;  %s1703_s6 = inlined_call_operand.hbm [shape: f32[2,4,16,16], index: 6, kind: input, shape index: {}]   ;;  %s1704_s7 = inlined_call_operand.hbm [shape: f32[2,4,16,16], index: 7, kind: input, shape index: {}]   ;;  %s1705_s8 = inlined_call_operand.hbm [shape: f32[2,1,4,4], index: 8, kind: output, shape index: {}]  }
   0x1   :  { %1713 = sst [smem:[#allocation14_spill]] %s1703_s6 }
   0x2   :  { %13 = vsyncpa [#allocation3], 0 }
   0x3   :  { %15 = vsyncpa [#allocation3 + $0x1], 0 }
   0x4   :  { %16 = vsyncpa [#allocation6], 0 }
   0x5   :  { %18 = vsyncpa [#allocation6 + $0x1], 0 }
   0x6   :  { %19 = vsyncpa [#allocation4], 0 }
   0x7   :  { %21 = vsyncpa [#allocation4 + $0x1], 0  ;;  %s1401_s27 = smov 0   ;;  %s1403_s28 = smov 0  }
   0x8   :  { %s1405_s29 = smov 0   ;;  %s1407_s30 = smov 0  }
   0x9   :  { %s1409_s9 = smov 0   ;;  %s1411_s10 = smov 0  }
   0xa LB: > { %1714 = sst [smem:[#allocation11_spill]] %s1334_s29  ;;  %s1029_s11 = sadd.s32 4294967295, %s1346_s10   ;;  %s1346_s10 = sphi %s1411_s10, %s27_s10   ;;  %s1342_s9 = sphi %s1409_s9, %s1739_s9   ;;  %s1338_s30 = sphi %s1407_s30, %s1738_s30   ;;  %s1334_s29 = sphi %s1405_s29, %s1734_s29   ;;  %s1330_s28 = sphi %s1403_s28, %s1737_s28   ;;  %s1326_s27 = sphi %s1401_s27, %s1736_s27  }
   0xb   : > { %s1030_s12 = sadd.s32 4294967294, %s1346_s10   ;;  %s39_s13 = sadd.s32 1, %s1342_s9 }
   0xc   : > { %s174_s14 = sadd.s32 1, %s1334_s29  ;;  %p41_p0 = scmp.ge.s32.totalorder %s39_s13, 2 }
   0xd   : > { %p181_p1 = scmp.ne.s32.totalorder %s1334_s29, %s1330_s28  ;;  %p182_p2 = scmp.eq.s32.totalorder %s1346_s10, 0 }
   0xe   : > { %p187_p3 = scmp.ne.s32.totalorder %s1330_s28, %s1326_s27  ;;  %s1741_s13 = smov (%p41_p0, %s39_s13), 0 }
   0xf   : > { %1715 = sst [smem:[#allocation12_spill]] %s1741_s13  ;;  %p1442_p4 = por %p182_p2, %p181_p1 }
  0x10   : > { %p188_p5 = scmp.eq.s32.totalorder %s1029_s11, 0  ;;  %s169_s16 = ssub.s32 %s1342_s9, %s1741_s13 }
  0x11   : > { %p239_p6 = scmp.eq.s32.totalorder %s1029_s11, 1  ;;  %p172_p7 = scmp.eq.s32.totalorder %s169_s16, 0 }
  0x12   : > { %p1448_p8 = por %p188_p5, %p187_p3  ;;  %p245_p10 = scmp.eq.s32.totalorder %s1030_s12, 1 }
  0x13   : > { %p1452_p9 = por %p239_p6, %p181_p1  ;;  %p1145_p13 = scmp.lt.s32.totalorder %s1346_s10, 2 }
  0x14   : > { %s1717_s17 = scalar_select %p1448_p8, 1, 0 }
  0x15   : > { %s1718_s18 = scalar_select %p1452_p9, 1, 0 }
  0x16   : > { %s1457_s19 = scalar_select %p172_p7, %s1334_s29, %s174_s14  }
  0x17   : > { %p1459_p11 = por %p245_p10, %p187_p3  ;;  %s1466_s21 = sand.u32 1, %s1334_s29  }
  0x18   : > { %1719 = sst [smem:[#allocation13_spill]] %s1457_s19  ;;  %s1706_s22 = sshll.u32 %s1466_s21, 6 }
  0x19   : > { %s1720_s20 = scalar_select %p1459_p11, 1, 0 }
  0x1a   : > { %s1707_s23 = sshll.u32 %s1342_s9, 10  ;;  %s1721_s6 = sld [smem:[#allocation14_spill]] }
  0x1b   : > { %s287_s11 = scalar_lea.vmem [#allocation2], %s1706_s22  ;;  %p1483_p0 = pnand %p1145_p13, %p1442_p4 }
  0x1c   : > { %s296_s12 = sshll.u32 %s287_s11, 4  ;;  %s1479_s12 = int_to_ptr.vmem [resolvable:$true] %s296_s12 }
  0x1d   : > { %p1202_p3 = pneg %p1483_p0 }
  0x20   : > { %s1475_s26 = scalar_lea.hbm %s1721_s6, %s1707_s23  ;;  %s1205_s15 = scalar_lea.hbm %s1721_s6, 2048 }
  0x21   : > { %s1200_s24 = scalar_lea.hbm %s1475_s26, 1024  ;;  %p1206_p4 = scmp.lt.u32.totalorder %s1475_s26, %s1721_s6 }
  0x22   : > { %p1201_p2 = scmp.ne.s32.totalorder %s1475_s26, %s1200_s24  ;;  %p1207_p7 = scmp.lt.u32.totalorder %s1205_s15, %s1200_s24 }
  0x23   : > { %p1209_p13 = scmp.lt.u32.totalorder %s1200_s24, %s1475_s26 }
  0x24   : > { %p1203_p5 = pnand %p1202_p3, %p1201_p2  ;;  %p1208_p10 = por %p1207_p7, %p1206_p4 }
  0x26   : > { %p1204_p6 = pneg %p1203_p5  ;;  %p1210_p12 = por %p1209_p13, %p1208_p10 }
  0x28   : > { %p1211_p1 = pnand %p1210_p12, %p1204_p6 }
  0x2a   : > { %1214 = shalt.err (!%p1211_p1)
}
  0x2b   : > { %s1215_s16 = scalar_lea.vmem %s1479_s12, 1024  ;;  %s1348_s25 = smov [#allocation2]  }
  0x2c   : > { %p1216_p2 = scmp.ne.s32.totalorder %s1479_s12, %s1215_s16  ;;  %s1220_s11 = sshll.u32 %s1348_s25, 4  ;;  %s1221_s11 = int_to_ptr.vmem [resolvable:$false] %s1220_s11 }
  0x2d   : > { %s1222_s22 = scalar_lea.vmem %s1221_s11, 2048  ;;  %p1223_p9 = scmp.lt.s32.totalorder %s1479_s12, %s1221_s11 }
  0x2e   : > { %p1218_p5 = pnand %p1216_p2, %p1202_p3  ;;  %p1224_p4 = scmp.lt.s32.totalorder %s1222_s22, %s1215_s16 }
  0x30   : > { %p1219_p11 = pneg %p1218_p5  ;;  %p1225_p7 = por %p1224_p4, %p1223_p9 }
  0x32   : > { %p1226_p10 = pnand %p1225_p7, %p1219_p11 }
  0x34   : > { %1229 = shalt.err (!%p1226_p10)
}
  0x35   : > { %s1711_s23 = smov 128   ;;  %s1350_s24 = smov 8  }
  0x36   : > { %s1723_s16 = scalar_lea.sflag [#allocation3], %s1466_s21  ;;  %p327_p9 = scmp.lt.s32.totalorder %s1346_s10, 3 }
  0x37   : > { %1137 = dma.hbm_to_vmem [thread:$0]  (!%p1483_p0), %s1475_s26, 1024, %s1479_s12, %s1723_s16, %s1711_s23, %s1711_s23, %s1350_s24  }
  0x38   : > { %s1724_s15 = sshll.u32 %s1342_s9, 10  ;;  %p1725_p11 = scmp.ge.s32.totalorder %s1346_s10, 1 }
  0x39   : > { %s1525_s22 = scalar_lea.hbm %s1704_s7, %s1724_s15  ;;  %s1727_s13 = sshll.u32 %s1466_s21, 6 }
  0x3a   : > { %p1529_p12 = pnand %p1725_p11, %p327_p9  ;;  %s310_s19 = scalar_lea.vmem [#allocation5], %s1727_s13 }
  0x3b   : > { %s319_s29 = sshll.u32 %s310_s19, 4  ;;  %s307_s26 = scalar_lea.sflag [#allocation6], %s1466_s21  ;;  %s1535_s29 = int_to_ptr.vmem [resolvable:$true] %s319_s29 }
  0x3c   : > { %s1230_s12 = scalar_lea.hbm %s1525_s22, 1024  ;;  %s1235_s25 = scalar_lea.hbm %s1704_s7, 2048 }
  0x3d   : > { %p1231_p1 = scmp.ne.s32.totalorder %s1525_s22, %s1230_s12  ;;  %p1236_p2 = scmp.lt.u32.totalorder %s1525_s22, %s1704_s7 }
  0x3e   : > { %p1237_p5 = scmp.lt.u32.totalorder %s1235_s25, %s1230_s12  ;;  %p1239_p7 = scmp.lt.u32.totalorder %s1230_s12, %s1525_s22 }
  0x3f   : > { %p1233_p6 = pnand %p1231_p1, %p1202_p3 }
  0x40   : > { %p1238_p4 = por %p1237_p5, %p1236_p2 }
  0x41   : > { %p1234_p13 = pneg %p1233_p6 }
  0x42   : > { %p1240_p10 = por %p1239_p7, %p1238_p4 }
  0x44   : > { %p1241_p9 = pnand %p1240_p10, %p1234_p13 }
  0x46   : > { %1244 = shalt.err (!%p1241_p9)
}
  0x47   : > { %s1245_s13 = scalar_lea.vmem %s1535_s29, 1024  ;;  %s1351_s19 = smov [#allocation5]  }
  0x48   : > { %p1246_p11 = scmp.ne.s32.totalorder %s1535_s29, %s1245_s13  ;;  %s1250_s16 = sshll.u32 %s1351_s19, 4  ;;  %s1251_s16 = int_to_ptr.vmem [resolvable:$false] %s1250_s16 }
  0x49   : > { %s1252_s23 = scalar_lea.vmem %s1251_s16, 2048  ;;  %p1253_p8 = scmp.lt.s32.totalorder %s1535_s29, %s1251_s16 }
  0x4a   : > { %p1248_p1 = pnand %p1246_p11, %p1202_p3  ;;  %p1254_p2 = scmp.lt.s32.totalorder %s1252_s23, %s1245_s13 }
  0x4c   : > { %p1249_p6 = pneg %p1248_p1  ;;  %p1255_p5 = por %p1254_p2, %p1253_p8 }
  0x4e   : > { %p1256_p4 = pnand %p1255_p5, %p1249_p6 }
  0x50   : > { %1259 = shalt.err (!%p1256_p4)
}
  0x51   : > { %s1728_s12 = smov 128   ;;  %331 = sbr.rel (%p1529_p12) target bundleno = 780 (0x30c), region = 52 }
  0x52   : > { %1140 = dma.hbm_to_vmem [thread:$0]  (!%p1483_p0), %s1525_s22, 1024, %s1535_s29, %s307_s26, %s1728_s12, %s1728_s12, %s1350_s24  }
  0x53   : > { %s1569_s15 = sand.u32 (!%p1529_p12), 1, %s1330_s28   ;;  %p1729_p8 = scmp.ne.s32.totalorder (!%p1529_p12), %s1717_s17, 0 }
  0x54   : > { %s1040_s25 = sshll.u32 (!%p1529_p12), %s1569_s15, 6  ;;  %s334_s11 = scalar_lea.sflag (!%p1529_p12), [#allocation3], %s1569_s15 }
  0x55   : > { %s1573_s14 = scalar_lea.vmem (!%p1529_p12), [#allocation2], %s1040_s25 }
  0x58   : > { %1313 = dma.done.wait (%p1729_p8), %s334_s11, 1024  }
  0x59   : > { %1315 = vsyncadd (%p1729_p8), %s334_s11, 4294966272  ;;  %s343_s29 = scalar_lea.sflag [#allocation6], %s1569_s15  ;;  %s1580_s6 = scalar_lea.vmem [#allocation5], %s1040_s25 }
  0x5a   : > { %1317 = dma.done.wait (%p1729_p8), %s343_s29, 1024  }
  0x5b   : > { %1319 = vsyncadd (%p1729_p8), %s343_s29, 4294966272  ;;  %v424_v0 = vld [vmem:[%s1698_s1] sm:$0xff]  ;;  %v425_v1 = vld [vmem:[%s1698_s1 + $0x8] sm:$0xff]  ;;  %vm426_vm0 = vcmask 130048   ;;  %v1352_v33 = vmov 0.0|0.0   ;;  %vm1353_vm1 = vmmov 0  }
  0x5c   : > { %v386_v2 = vld [vmem:[%s1573_s14] sm:$0xff]  ;;  %v1121_v3 = vpack.c.bf16 %v425_v1, %v424_v0  ;;  %v1043_v5 = vld [vmem:[%s1573_s14 + $0x10] sm:$0xff]  ;;  %v387_v14 = vld [vmem:[%s1573_s14 + $0x8] sm:$0xff]  ;;  %1125 = vmatprep.subr.bf16.mxu1 %v1352_v33  ;;  %v1354_v34 = vmov 0.0   ;;  %vm596_vm2 = vcmask 1043456   ;;  %s1042_s25 = sshll.u32 %s1569_s15, 2 }
  0x5d   : > { %v388_v4 = vld [vmem:[%s1580_s6] sm:$0xff]  ;;  %v1045_v6 = vld [vmem:[%s1580_s6 + $0x10] sm:$0xff]  ;;  %v389_v15 = vld [vmem:[%s1580_s6 + $0x8] sm:$0xff]  ;;  %1098 = vmatprep.mubr.msk.f32.mxu1 %vm1353_vm1, %v1354_v34  ;;  %vm584_vm3 = vcmask 27648   ;;  %s1626_s11 = scalar_lea.vmem [#allocation7], %s1042_s25  ;;  %vm592_vm4 = vcmask 31744  }
  0x5e   : > { %v390_v7 = vsub.f32 %v386_v2, %v388_v4  ;;  %v400_v8 = vsub.f32 %v1043_v5, %v1045_v6  ;;  %v1047_v9 = vld [vmem:[%s1573_s14 + $0x20] sm:$0xff]  ;;  %v1051_v11 = vld [vmem:[%s1573_s14 + $0x30] sm:$0xff]  ;;  %1122 = vmatprep.subr.bf16.mxu0 %v1121_v3  ;;  %v391_v18 = vsub.f32 %v387_v14, %v389_v15  ;;  %v1044_v19 = vld [vmem:[%s1573_s14 + $0x18] sm:$0xff]  ;;  %s1067_s24 = sshll.u32 %s1338_s30, 6  ;;  %s920_s22 = sshll.u32 %s1626_s11, 4  ;;  %s1648_s22 = int_to_ptr.vmem [resolvable:$true] %s920_s22 }
  0x5f   : > { %v1049_v10 = vld [vmem:[%s1580_s6 + $0x20] sm:$0xff]  ;;  %v1053_v13 = vld [vmem:[%s1580_s6 + $0x30] sm:$0xff]  ;;  %1124 = vmatpush3.bf16.msra.mxu0 %v1121_v3  ;;  %v1046_v20 = vld [vmem:[%s1580_s6 + $0x18] sm:$0xff]  ;;  %s1646_s13 = scalar_lea.hbm %s1705_s8, %s1067_s24  ;;  %s907_s19 = scalar_lea.sflag [#allocation4], %s1569_s15 }
  0x60   : > { %v410_v12 = vsub.f32 %v1047_v9, %v1049_v10  ;;  %v402_v16 = vadd.f32 %v400_v8, %v390_v7  ;;  %v420_v17 = vsub.f32 %v1051_v11, %v1053_v13  ;;  %v1048_v21 = vld [vmem:[%s1573_s14 + $0x28] sm:$0xff]  ;;  %v401_v22 = vsub.f32 %v1044_v19, %v1046_v20  ;;  %v1052_v24 = vld [vmem:[%s1573_s14 + $0x38] sm:$0xff]  ;;  %1101 = vmatprep.subr.mxu0 %v1354_v34  ;;  %v508_v38 = vld [vmem:[%s1697_s0] sm:$0xf]  ;;  %s1260_s16 = scalar_lea.vmem %s1648_s22, 64  ;;  %p1730_p3 = scmp.ne.s32.totalorder %s1718_s18, 0 }
  0x61   : > { %v1050_v23 = vld [vmem:[%s1580_s6 + $0x28] sm:$0xff]  ;;  %v1054_v25 = vld [vmem:[%s1580_s6 + $0x38] sm:$0xff]  ;;  %v591_v39 = vld [vmem:[%s1702_s5] sm:$0xf]  ;;  %p1261_p0 = scmp.ne.s32.totalorder %s1648_s22, %s1260_s16  ;;  %s1355_s30 = smov [#allocation7]  }
  0x62   : > { %v412_v26 = vadd.f32 %v410_v12, %v402_v16  ;;  %v411_v27 = vsub.f32 %v1048_v21, %v1050_v23  ;;  %v403_v28 = vadd.f32 %v401_v22, %v391_v18  ;;  %v421_v29 = vsub.f32 %v1052_v24, %v1054_v25  ;;  %v670_v40 = vld [vmem:[%s1701_s4] sm:$0xf]  ;;  %s1264_s23 = sshll.u32 %s1355_s30, 4  ;;  %s1265_s23 = int_to_ptr.vmem [resolvable:$false] %s1264_s23 }
  0x63   : > { %v744_v44 = vld [vmem:[%s1699_s2] sm:$0xf]  ;;  %p1262_p12 = pnand %p1261_p0, %p1730_p3  ;;  %s1266_s12 = scalar_lea.vmem %s1265_s23, 128 }
  0x64   : > { %v422_v30 = vadd.f32 %v420_v17, %v412_v26  ;;  %v413_v31 = vadd.f32 %v411_v27, %v403_v28  ;;  %v820_v45 = vld [vmem:[%s1700_s3] sm:$0xf]  ;;  %p1267_p7 = scmp.lt.s32.totalorder %s1648_s22, %s1265_s23  ;;  %p1268_p10 = scmp.lt.s32.totalorder %s1266_s12, %s1260_s16 }
  0x65   : > { %p1263_p13 = pneg %p1262_p12 }
  0x66   : > { %1091 = vmatprep.mubr.msk.f32.mxu0 %vm426_vm0, %v422_v30  ;;  %v423_v32 = vadd.f32 %v421_v29, %v413_v31  ;;  %p1269_p9 = por %p1268_p10, %p1267_p7 }
  0x68   : > { %1092 = vmatmul.mubr.msk.f32.vlgmr.msra.gmra.mrb[0].mxu0 %vm426_vm0, %v423_v32  ;;  %p1270_p11 = pnand %p1269_p9, %p1263_p13 }
  0x69   : > { %1103 = vmatprep.mubr.msk.f32.mxu0 %vm1353_vm1, %v1354_v34  ;;  %1102 = vmatpush3.msk.msra.mxu0 %vm596_vm2, %v591_v39 }
  0x6a   : > { %1111 = vmatprep.subr.mxu0 %v1354_v34 }
 0x13b   : > { %v1093_v35 = vpop.f32.mrb[0].mxu0 }
 0x13c   : > { %v499_v36 = vpop.f32.mrb[1].mxu0 }
 0x13d   : > { %v1126_v37 = vpack.c.bf16 %v1093_v35, %v499_v36 }
 0x13f   : > { %1127 = vmatpush3.bf16.msra.mxu1 %v1126_v37 }
 0x140   : > { %1106 = vmatprep.subr.mxu1 %v1354_v34 }
 0x142   : > { %1099 = vmatmul.mubr.msk.f32.vlgmr.msra.gmra.mrb[0].mxu1 %vm426_vm0, %v508_v38 }
 0x143   : > { %1108 = vmatprep.mubr.msk.f32.mxu1 %vm1353_vm1, %v1354_v34  ;;  %1107 = vmatpush3.msk.msra.mxu1 %vm596_vm2, %v670_v40 }
 0x144   : > { %1116 = vmatprep.subr.mxu1 %v1354_v34 }
 0x215   : > { %v578_v41 = vpop.f32.mrb[0].mxu1 }
 0x216   : > { %585 = vst.msk [vmem:[%s1626_s11] sm:$0xf] %vm584_vm3, %v578_v41  ;;  %v1100_v42 = vpop.f32.mrb[1].mxu1 }
 0x21d   : > { %v590_v43 = vld [vmem:[%s1626_s11] sm:$0xf] }
 0x21e   : > { %1104 = vmatmul.mubr.msk.f32.vlgmr.msra.gmra.mrb[2].mxu0 %vm592_vm4, %v590_v43  ;;  %1109 = vmatmul.mubr.msk.f32.vlgmr.msra.gmra.mrb[2].mxu1 %vm592_vm4, %v590_v43 }
 0x21f   : > { %1112 = vmatpush3.msk.msra.mxu0 %vm596_vm2, %v590_v43  ;;  %1117 = vmatpush3.msk.msra.mxu1 %vm596_vm2, %v590_v43 }
 0x220   : > { %1113 = vmatprep.mubr.msk.f32.mxu0 %vm1353_vm1, %v1354_v34  ;;  %1118 = vmatprep.mubr.msk.f32.mxu1 %vm1353_vm1, %v1354_v34 }
 0x222   : > { %1114 = vmatmul.mubr.msk.f32.vlgmr.msra.gmra.mrb[4].mxu0 %vm592_vm4, %v744_v44  ;;  %1119 = vmatmul.mubr.msk.f32.vlgmr.msra.gmra.mrb[4].mxu1 %vm592_vm4, %v820_v45 }
 0x2f1   : > { %v666_v46 = vpop.f32.mrb[2].mxu0  ;;  %v740_v47 = vpop.f32.mrb[2].mxu1 }
 0x2f2   : > { %v894_v48 = vsub.f32 %v590_v43, %v666_v46  ;;  %v896_v49 = vsub.f32 %v590_v43, %v740_v47  ;;  %v1105_v50 = vpop.f32.mrb[3].mxu0  ;;  %v1110_v51 = vpop.f32.mrb[3].mxu1 }
 0x2f4   : > { %v895_v52 = vmul.f32 %v894_v48, %v894_v48  ;;  %v897_v53 = vmul.f32 %v896_v49, %v896_v49 }
 0x2f5   : > { %v816_v54 = vpop.f32.mrb[4].mxu0  ;;  %v890_v55 = vpop.f32.mrb[4].mxu1 }
 0x2f6   : > { %v898_v56 = vadd.f32 %v897_v53, %v895_v52  ;;  %v899_v57 = vsub.f32 %v590_v43, %v816_v54  ;;  %v902_v58 = vsub.f32 %v590_v43, %v890_v55  ;;  %v1115_v59 = vpop.f32.mrb[5].mxu0  ;;  %v1120_v60 = vpop.f32.mrb[5].mxu1 }
 0x2f8   : > { %v900_v61 = vmul.f32 %v899_v57, %v899_v57  ;;  %v903_v63 = vmul.f32 %v902_v58, %v902_v58 }
 0x2fa   : > { %v901_v62 = vadd.f32 %v900_v61, %v898_v56 }
 0x2fc   : > { %v904_v0 = vadd.f32 %v903_v63, %v901_v62 }
 0x2fe   : > { %905 = vst.msk [vmem:[%s1626_s11] sm:$0xf] %vm584_vm3, %v904_v0 }
 0x2ff   : > { %1273 = shalt.err (!%p1270_p11)
}
 0x300   : > { %s1274_s15 = scalar_lea.hbm %s1646_s13, 64  ;;  %s1278_s14 = scalar_lea.hbm %s1705_s8, 128 }
 0x301   : > { %p1275_p1 = scmp.ne.s32.totalorder %s1646_s13, %s1274_s15  ;;  %p1279_p5 = scmp.lt.u32.totalorder %s1646_s13, %s1705_s8 }
 0x302   : > { %p1280_p4 = scmp.lt.u32.totalorder %s1278_s14, %s1274_s15  ;;  %p1282_p0 = scmp.lt.u32.totalorder %s1274_s15, %s1646_s13 }
 0x303   : > { %p1276_p6 = pnand %p1275_p1, %p1730_p3 }
 0x304   : > { %p1281_p8 = por %p1280_p4, %p1279_p5 }
 0x305   : > { %p1277_p2 = pneg %p1276_p6 }
 0x306   : > { %p1283_p12 = por %p1282_p0, %p1281_p8 }
 0x308   : > { %p1284_p13 = pnand %p1283_p12, %p1277_p2 }
 0x30a   : > { %1287 = shalt.err (!%p1284_p13)
}
 0x30b   : > { %1132 = dma.vmem_to_hbm [thread:$0]  (%p1730_p3), %s1648_s22, 64, %s1646_s13, %s907_s19  }
 0x30c PF: > { %s932_s21 = sand.u32 1, %s1326_s27   ;;  %p1731_p7 = scmp.ne.s32.totalorder %s1720_s20, 0 }
 0x30d   : > { %p1732_p10 = scmp.ge.s32.totalorder %s1346_s10, 2  ;;  %s933_s24 = scalar_lea.sflag [#allocation4], %s932_s21 }
 0x30f   : > { %p1142_p9 = pnand %p1732_p10, %p1731_p7 }
 0x311   : > { %1321 = dma.done.wait (!%p1142_p9), %s933_s24, 64  }
 0x312   : > { %1323 = vsyncadd (!%p1142_p9), %s933_s24, 4294967232  ;;  %s27_s10 = sadd.s32 1, %s1346_s10   ;;  %s1733_s26 = sld [smem:[#allocation11_spill]] }
 0x313   : > { %p24_p11 = scmp.ge.s32.totalorder %s27_s10, 4   ;;  %s1734_s29 = sld [smem:[#allocation13_spill]] }
 0x314   : > { %s1735_s18 = sld [smem:[#allocation12_spill]]  ;;  %s1736_s27 = smov %s1330_s28 }
 0x315   : > { %s1738_s30 = smov %s1342_s9  ;;  %26 = sbr.rel (!%p24_p11) target bundleno = 10 (0xa), region = 121 }
 0x318   : > { %s1737_s28 = smov %s1733_s26 }
 0x31a   : > { %s1739_s9 = smov %s1735_s18 }
 0x31c   :  { %938 = vsyncpa [#allocation3], 1 }
 0x31d   :  { %940 = vsyncpa [#allocation3 + $0x1], 1 }
 0x31e   :  { %941 = vsyncpa [#allocation6], 1 }
 0x31f   :  { %943 = vsyncpa [#allocation6 + $0x1], 1 }
 0x320   :  { %944 = vsyncpa [#allocation4], 1 }
 0x321   :  { %946 = vsyncpa [#allocation4 + $0x1], 1 }

</bundles_post_ra>
